<compile_context>
chip_gen: v7x
topology: tpu7x:2x2x1
jax: 0.10.0
libtpu: 0.0.40
codegen_flags: <defaults>
</compile_context>

<pallas_src>
import functools

import numpy as np
import jax
import jax.numpy as jnp
from jax.experimental import pallas as pl
from jax.experimental.pallas import tpu as pltpu


# ----------------------------------------------------------------------------
# sincos position-embedding helpers (numpy, same semantics as the module)
# ----------------------------------------------------------------------------
def get_1d_sincos_pos_embed_from_grid(embed_dim, pos):
    if embed_dim % 2 != 0:
        raise ValueError('embed_dim must be divisible by 2')
    omega = np.arange(embed_dim // 2, dtype=np.float64)
    omega /= embed_dim / 2.0
    omega = 1.0 / 10000 ** omega
    pos = pos.reshape(-1)
    out = np.einsum('m,d->md', pos, omega)
    emb_sin = np.sin(out)
    emb_cos = np.cos(out)
    emb = np.concatenate([emb_sin, emb_cos], axis=1)
    return emb


def get_1d_sincos_pos_embed(embed_dim, grid_size, cls_token=False, extra_tokens=0,
                            interpolation_scale=1.0, base_size=16):
    grid = np.arange(grid_size, dtype=np.float32) / (grid_size / base_size) / interpolation_scale
    pos_embed = get_1d_sincos_pos_embed_from_grid(embed_dim, grid)
    if cls_token and extra_tokens > 0:
        pos_embed = np.concatenate([np.zeros([extra_tokens, embed_dim]), pos_embed], axis=0)
    return pos_embed


def get_2d_sincos_pos_embed_from_grid(embed_dim, grid):
    if embed_dim % 2 != 0:
        raise ValueError('embed_dim must be divisible by 2')
    emb_h = get_1d_sincos_pos_embed_from_grid(embed_dim // 2, grid[0])
    emb_w = get_1d_sincos_pos_embed_from_grid(embed_dim // 2, grid[1])
    emb = np.concatenate([emb_h, emb_w], axis=1)
    return emb


def get_2d_sincos_pos_embed(embed_dim, grid_size, cls_token=False, extra_tokens=0,
                            interpolation_scale=(1.0, 1.0), base_size=(16, 16)):
    grid_h = np.arange(grid_size[0], dtype=np.float32) / (grid_size[0] / base_size[0]) / interpolation_scale[0]
    grid_w = np.arange(grid_size[1], dtype=np.float32) / (grid_size[1] / base_size[1]) / interpolation_scale[1]
    grid = np.meshgrid(grid_w, grid_h)
    grid = np.stack(grid, axis=0)
    grid = grid.reshape([2, 1, grid_size[1], grid_size[0]])
    pos_embed = get_2d_sincos_pos_embed_from_grid(embed_dim, grid)
    if cls_token and extra_tokens > 0:
        pos_embed = np.concatenate([np.zeros([extra_tokens, embed_dim]), pos_embed], axis=0)
    return pos_embed


# ----------------------------------------------------------------------------
# Generation-aware VMEM budgeting + tile-size selection
# ----------------------------------------------------------------------------
_LANE = 128


def _vmem_limits():
    """Returns (vmem_limit_bytes for CompilerParams, selection budget)."""
    phys = 128 * 1024 * 1024                      # v5e / v6e physical VMEM
    try:
        info = pltpu.get_tpu_info()
        phys = int(getattr(info, "vmem_capacity_bytes", phys)) or phys
    except Exception:
        pass
    # v7x: 64 MiB physical -> limit 48 MiB ; v5e/v6e: 128 MiB -> limit 64 MiB.
    limit = min((phys * 3) // 4, 64 * 1024 * 1024)
    budget = limit - 8 * 1024 * 1024              # headroom for compiler scratch
    return limit, max(budget, 8 * 1024 * 1024)


def _tile_vmem_bytes(tile_m, N, T, E, K, out_bytes):
    """VMEM of one grid step, counting real buffer counts and K lane padding."""
    x_blk = tile_m * max(K, _LANE) * 2            # bf16 X tile, K lane-padded to 128
    o_blk = tile_m * E * out_bytes                # output tile
    streamed = 2 * (x_blk + o_blk)                # streamed tiles are double-buffered
    resident = (max(K, 8) * E * 2                 # W              — Buffered(1)
                + N * E * 4                       # pos            — Buffered(1)
                + max(T, 8) * E * 4)              # bias+temporal  — Buffered(1)
    return streamed + resident


def _choose_frames_per_block(B, T, N, E, K, out_bytes, vmem_budget, target_rows=1024):
    """Pick how many whole frames each M-tile covers (must divide T)."""
    total_frames = B * T
    divisors = [d for d in range(1, T + 1) if T % d == 0]
    cands = [d for d in divisors
             if _tile_vmem_bytes(d * N, N, T, E, K, out_bytes) <= vmem_budget]
    if not cands:                                  # nothing fits — smallest aligned tile
        cands = [1]

    def score(d):
        tile_m = d * N
        nt = total_frames // d
        big_tile = tile_m >= 512                   # amortize ~0.35 us/step overhead
        many_tiles = (nt >= 6) and (nt % 2 == 0)   # >= 3 pipelined steps per v7x TC
        return (big_tile and many_tiles,           # best: both
                big_tile,
                many_tiles,
                min(tile_m, target_rows),          # grow tile toward target_rows ...
                -tile_m)                           # ... then prefer more (smaller) tiles
    return max(cands, key=score)


# ----------------------------------------------------------------------------
# Pallas kernel: one lane-dense M-tile = FPB whole frames of N tokens each.
#   out_tile = (x_tile @ W) + pos (per token within frame) + bt (per frame)
# ----------------------------------------------------------------------------
def _patch_embed_kernel(x_ref, w_ref, pos_ref, bt_ref, o_ref, *, FPB, N, E, n_tb):
    # x_ref:  (FPB*N, K) bf16 patch rows for this tile (streamed)
    # w_ref:  (K, E)     bf16 weight, K-order = (ph, pw, c)        (resident)
    # pos_ref:(N, E)     f32 2D sincos pos embed                   (resident)
    # bt_ref: (T, E)     f32 conv bias + temporal pos embed        (resident)
    # o_ref:  (FPB*N, E) output tile (bf16 by default)
    y = jnp.dot(x_ref[...], w_ref[...], preferred_element_type=jnp.float32)   # MXU
    if n_tb > 1:
        t0 = (pl.program_id(0) % n_tb) * FPB       # first frame covered by this tile
        bt = bt_ref[pl.ds(t0, FPB), :]             # (FPB, E) f32
    else:
        bt = bt_ref[...]                           # tile covers all T frames
    # N % 8 == 0 and E % 128 == 0 (asserted in wrapper) => layout-preserving
    # sublane split; pos/bt adds stay f32 (v5e has no bf16 VPU path).
    y = y.reshape(FPB, N, E) + pos_ref[...][None, :, :] + bt[:, None, :]
    o_ref[...] = y.reshape(FPB * N, E).astype(o_ref.dtype)


def patch_embed_2d_pallas(latent, weight, bias, pos_embed, temp_pos_embed,
                          patch_size, out_dtype=jnp.bfloat16):
    """latent: (B, C, T, H, W) float32.  Returns (B, T, N, E) in out_dtype."""
    B, C, T, H, W = latent.shape
    p = patch_size
    assert H % p == 0 and W % p == 0, "H and W must be divisible by patch_size"
    Hp, Wp = H // p, W // p
    N = Hp * Wp
    E = weight.shape[0]
    K = C * p * p
    assert N % 8 == 0, "N = (H/p)*(W/p) must be a multiple of 8 (sublane split)"
    assert E % 128 == 0, "embed_dim must be a multiple of 128 (lane-dense stores)"

    pos = jnp.asarray(pos_embed, jnp.float32).reshape(N, E)
    tpe = jnp.asarray(temp_pos_embed, jnp.float32).reshape(-1, E)
    assert tpe.shape[0] == T, "temporal pos embed must cover T frames"

    # --- glue: unfold stride==kernel conv into patch rows.  Single XLA transpose
    # with K-order (ph, pw, c) so the trailing dim is C (never p=2), fused with
    # the bf16 cast so the HBM intermediate X is half-size.
    # TODO(synk): fuse this unfold into the kernel (raw (C,FPB,H,W) blocks) to
    #             remove the remaining X HBM round trip.
    x = latent.reshape(B, C, T, Hp, p, Wp, p)
    x = jnp.transpose(x, (0, 2, 3, 5, 4, 6, 1))          # (B, T, Hp, Wp, ph, pw, C)
    x = x.reshape(B * T * N, K).astype(jnp.bfloat16)     # (M, K)

    # Weight rows permuted to the same (ph, pw, c) K-order.
    w2 = jnp.transpose(weight, (2, 3, 1, 0)).reshape(K, E).astype(jnp.bfloat16)
    # Fold the conv bias into the tiny resident temporal table: bt = bias + temp.
    bt = tpe + jnp.asarray(bias, jnp.float32)[None, :]   # (T, E)

    out_bytes = jnp.dtype(out_dtype).itemsize
    vmem_limit, vmem_budget = _vmem_limits()
    FPB = _choose_frames_per_block(B, T, N, E, K, out_bytes, vmem_budget)
    tile_m = FPB * N
    n_tb = T // FPB
    num_tiles = (B * T) // FPB

    kernel = functools.partial(_patch_embed_kernel, FPB=FPB, N=N, E=E, n_tb=n_tb)
    resident = pl.Buffered(1)        # constant-index inputs: no double buffer

    out = pl.pallas_call(
        kernel,
        out_shape=jax.ShapeDtypeStruct((B * T * N, E), out_dtype),
        grid_spec=pltpu.PrefetchScalarGridSpec(
            num_scalar_prefetch=0,
            grid=(num_tiles,),
            in_specs=[
                pl.BlockSpec((tile_m, K), lambda i: (i, 0)),                      # X (streamed)
                pl.BlockSpec((K, E), lambda i: (0, 0), pipeline_mode=resident),   # W
                pl.BlockSpec((N, E), lambda i: (0, 0), pipeline_mode=resident),   # pos
                pl.BlockSpec((T, E), lambda i: (0, 0), pipeline_mode=resident),   # bias+temporal
            ],
            out_specs=pl.BlockSpec((tile_m, E), lambda i: (i, 0)),
        ),
        compiler_params=pltpu.CompilerParams(
            dimension_semantics=("parallel",),
            vmem_limit_bytes=vmem_limit),
    )(x, w2, pos, bt)
    return out.reshape(B, T, N, E)


# ----------------------------------------------------------------------------
# Module-level wrapper reproducing PatchEmbed2D.forward (defaults:
# layer_norm=False, flatten=True, use_abs_pos=True, bias=True)
# ----------------------------------------------------------------------------
def patch_embed_2d_forward(latent, num_frames, weight, bias, pos_embed,
                           temp_pos_embed, patch_size, out_dtype=jnp.bfloat16):
    B, C, T, H, W = latent.shape
    assert T == num_frames, "test covers the video-only path (t == num_frames)"
    out = patch_embed_2d_pallas(latent, weight, bias, pos_embed,
                                temp_pos_embed, patch_size, out_dtype)   # (B, T, N, E)
    Bc, Tc, N, E = out.shape
    video_latent = out.reshape(Bc, Tc * N, E)    # 'b t n c -> b (t n) c'
    image_latent = None                          # latent[:, num_frames:] is empty
    # TODO(synk): num_frames==1 swap and sequence-parallel temp-pos branches are
    #             not exercised here.
    return video_latent, image_latent


if __name__ == "__main__":
    # Small, module-consistent config.
    B, C, T, H, W = 2, 4, 2, 16, 16
    patch_size = 2
    embed_dim = 128
    num_frames = T

    Hp, Wp = H // patch_size, W // patch_size        # (8, 8) -> N = 64
    base_size = (Hp, Wp)
    interpolation_scale = (1.0, 1.0)

    # Buffers exactly as in __init__
    pos_embed_np = get_2d_sincos_pos_embed(
        embed_dim, (Hp, Wp), base_size=base_size,
        interpolation_scale=interpolation_scale).astype(np.float32)       # (64, 128)
    nf = (num_frames - 1) // 1 + 1 if num_frames % 2 == 1 else num_frames // 1
    temp_pos_embed_np = get_1d_sincos_pos_embed(
        embed_dim, nf, base_size=nf, interpolation_scale=1.0).astype(np.float32)  # (2, 128)

    # Deterministic parameter init (synthetic, not a checkpoint).
    key = jax.random.PRNGKey(0)
    k_x, k_w, k_b = jax.random.split(key, 3)
    latent = jax.random.normal(k_x, (B, C, T, H, W), dtype=jnp.float32)
    weight = jax.random.normal(k_w, (embed_dim, C, patch_size, patch_size),
                               dtype=jnp.float32) * 0.02
    bias = jax.random.normal(k_b, (embed_dim,), dtype=jnp.float32) * 0.02

    pos_embed = jnp.asarray(pos_embed_np)
    temp_pos_embed = jnp.asarray(temp_pos_embed_np)

    fwd = jax.jit(patch_embed_2d_forward, static_argnums=(1, 6))
    video_latent, image_latent = fwd(latent, num_frames, weight, bias,
                                     pos_embed, temp_pos_embed, patch_size)
    video_latent = jax.block_until_ready(video_latent)

    # Pure-JAX f32 reference (module semantics, standard (c,ph,pw) K-order so it
    # also checks the kernel's K permutation).  Kernel matmuls in bf16 on the MXU
    # and stores bf16 output, so compare at 2e-2 tolerance.
    x = jnp.transpose(latent, (0, 2, 1, 3, 4)).reshape(B, T, C, Hp, patch_size, Wp, patch_size)
    x = jnp.transpose(x, (0, 1, 3, 5, 2, 4, 6)).reshape(B, T, Hp * Wp, C * patch_size * patch_size)
    ref = jnp.einsum("btnk,ek->btne", x, weight.reshape(embed_dim, -1)) + bias
    ref = ref + pos_embed[None, None]                 # 2D pos embed
    ref = ref + temp_pos_embed[None, :, None, :]      # temporal pos embed
    ref = ref.reshape(B, T * Hp * Wp, embed_dim)

    assert video_latent.shape == (B, T * Hp * Wp, embed_dim)
    assert video_latent.dtype == jnp.bfloat16
    assert image_latent is None
    np.testing.assert_allclose(np.asarray(video_latent.astype(jnp.float32)),
                               np.asarray(ref), rtol=2e-2, atol=2e-2)
    print("KERNEL_OK")
</pallas_src>

<mosaic_0001>
module attributes {stable_mosaic.version = 11 : i64} {
  func.func @_patch_embed_kernel(%arg0: i32, %arg1: memref<128x16xbf16, #tpu.memory_space<vmem>>, %arg2: memref<16x128xbf16, #tpu.memory_space<vmem>>, %arg3: memref<64x128xf32, #tpu.memory_space<vmem>>, %arg4: memref<2x128xf32, #tpu.memory_space<vmem>>, %arg5: memref<128x128xbf16, #tpu.memory_space<vmem>>) attributes {dimension_semantics = [#tpu.dimension_semantics<parallel>], iteration_bounds = array<i64: 2>, scalar_prefetch = 0 : i64, scratch_operands = 0 : i64, tpu.core_type = #tpu.core_type<tc>, window_params = [{transform_indices = @transform_0, window_bounds = array<i64: 128, 16>}, {pipeline_mode = #tpu.pipeline_mode<synchronous>, transform_indices = @transform_1, window_bounds = array<i64: 16, 128>}, {pipeline_mode = #tpu.pipeline_mode<synchronous>, transform_indices = @transform_2, window_bounds = array<i64: 64, 128>}, {pipeline_mode = #tpu.pipeline_mode<synchronous>, transform_indices = @transform_3, window_bounds = array<i64: 2, 128>}, {transform_indices = @transform_4, window_bounds = array<i64: 128, 128>}]} {
    %c0 = arith.constant 0 : index
    %c0_0 = arith.constant 0 : index
    %0 = vector.load %arg1[%c0, %c0_0] : memref<128x16xbf16, #tpu.memory_space<vmem>>, vector<128x16xbf16>
    %c0_1 = arith.constant 0 : index
    %c0_2 = arith.constant 0 : index
    %1 = vector.load %arg2[%c0_1, %c0_2] : memref<16x128xbf16, #tpu.memory_space<vmem>>, vector<16x128xbf16>
    %cst = arith.constant dense<0.000000e+00> : vector<128x128xf32>
    %2 = tpu.matmul %0, %1, %cst {dimension_numbers = #tpu.dot_dimension_numbers<[1], [0], [0], [1], [0, 0, 1, 1], [], []>} : vector<128x16xbf16>, vector<16x128xbf16>, vector<128x128xf32> -> vector<128x128xf32>
    %c0_3 = arith.constant 0 : index
    %c0_4 = arith.constant 0 : index
    %3 = vector.load %arg4[%c0_3, %c0_4] : memref<2x128xf32, #tpu.memory_space<vmem>>, vector<2x128xf32>
    %4 = vector.shape_cast %2 : vector<128x128xf32> to vector<2x64x128xf32>
    %c0_5 = arith.constant 0 : index
    %c0_6 = arith.constant 0 : index
    %5 = vector.load %arg3[%c0_5, %c0_6] : memref<64x128xf32, #tpu.memory_space<vmem>>, vector<64x128xf32>
    %6 = vector.shape_cast %5 : vector<64x128xf32> to vector<1x64x128xf32>
    %7 = vector.broadcast %6 : vector<1x64x128xf32> to vector<2x64x128xf32>
    %8 = arith.addf %4, %7 : vector<2x64x128xf32>
    %9 = vector.shape_cast %3 : vector<2x128xf32> to vector<2x1x128xf32>
    %10 = vector.broadcast %9 : vector<2x1x128xf32> to vector<2x64x128xf32>
    %11 = arith.addf %8, %10 : vector<2x64x128xf32>
    %12 = vector.shape_cast %11 : vector<2x64x128xf32> to vector<128x128xf32>
    %13 = arith.truncf %12 : vector<128x128xf32> to vector<128x128xbf16>
    %c0_7 = arith.constant 0 : index
    %c0_8 = arith.constant 0 : index
    %14 = vector.load %arg5[%c0_7, %c0_8] : memref<128x128xbf16, #tpu.memory_space<vmem>>, vector<128x128xbf16>
    tpu.vector_store %arg5[%c0_7, %c0_8], %13 {strides = array<i32>} : memref<128x128xbf16, #tpu.memory_space<vmem>>, vector<128x128xbf16>,
    return
  }
  func.func @transform_0(%arg0: i32) -> (i32, i32) {
    %c0_i32 = arith.constant 0 : i32
    %c0_i32_0 = arith.constant 0 : i32
    return %arg0, %c0_i32 : i32, i32
  }
  func.func @transform_1(%arg0: i32) -> (i32, i32) {
    %c0_i32 = arith.constant 0 : i32
    %c0_i32_0 = arith.constant 0 : i32
    %c0_i32_1 = arith.constant 0 : i32
    return %c0_i32, %c0_i32_0 : i32, i32
  }
  func.func @transform_2(%arg0: i32) -> (i32, i32) {
    %c0_i32 = arith.constant 0 : i32
    %c0_i32_0 = arith.constant 0 : i32
    %c0_i32_1 = arith.constant 0 : i32
    return %c0_i32, %c0_i32_0 : i32, i32
  }
  func.func @transform_3(%arg0: i32) -> (i32, i32) {
    %c0_i32 = arith.constant 0 : i32
    %c0_i32_0 = arith.constant 0 : i32
    %c0_i32_1 = arith.constant 0 : i32
    return %c0_i32, %c0_i32_0 : i32, i32
  }
  func.func @transform_4(%arg0: i32) -> (i32, i32) {
    %c0_i32 = arith.constant 0 : i32
    %c0_i32_0 = arith.constant 0 : i32
    return %arg0, %c0_i32 : i32, i32
  }
}

</mosaic_0001>

<bundles_post_ra>
// kernel: patch_embed_2d_forward.1
= control target key start
LH: loop header
LB: loop body
LE: loop exit
PB: predicated region body
PF: predicated region fallthrough
CT: control target
= control target key end

     0   :  { %9 = vsyncpa [#allocation3], 0  ;;  %s1470_s0 = inlined_call_operand.hbm [shape: bf16[256,16], index: 0, kind: input, shape index: {}]   ;;  %s1471_s1 = inlined_call_operand.hbm [shape: bf16[16,128], index: 1, kind: input, shape index: {}]   ;;  %s1472_s2 = inlined_call_operand.hbm [shape: f32[64,128], index: 2, kind: input, shape index: {}]   ;;  %s1473_s3 = inlined_call_operand.hbm [shape: f32[2,128], index: 3, kind: input, shape index: {}]   ;;  %s1474_s4 = inlined_call_operand.hbm [shape: bf16[256,128], index: 4, kind: output, shape index: {}]  }
   0x1   :  { %11 = vsyncpa [#allocation3 + $0x1], 0 }
   0x2   :  { %12 = vsyncpa [#allocation6], 0 }
   0x3   :  { %13 = vsyncpa [#allocation9], 0 }
   0x4   :  { %14 = vsyncpa [#allocation4], 0 }
   0x5   :  { %16 = vsyncpa [#allocation4 + $0x1], 0  ;;  %s1185_s15 = smov 0   ;;  %s1187_s16 = smov 0  }
   0x6   :  { %s1189_s17 = smov 0   ;;  %s1191_s18 = smov 0  }
   0x7 LB: > { %s1206_s19 = sadd.s32 4294967295, %s1146_s18   ;;  %s717_s20 = sadd.s32 4294967294, %s1146_s18   ;;  %s1146_s18 = sphi %s1191_s18, %s1499_s18   ;;  %s1142_s17 = sphi %s1189_s17, %s1498_s17   ;;  %s1138_s16 = sphi %s1187_s16, %s1497_s16   ;;  %s1134_s15 = sphi %s1185_s15, %s1496_s15  }
   0x8   : > { %p42_p0 = scmp.ne.s32.totalorder %s1138_s16, %s1134_s15  ;;  %p1475_p1 = scmp.eq.s32.totalorder %s1206_s19, 0 }
   0x9   : > { %p135_p3 = scmp.eq.s32.totalorder %s717_s20, 1  ;;  %p718_p5 = scmp.ge.s32.totalorder %s1146_s18, 1 }
   0xa   : > { %p1215_p4 = por %p1475_p1, %p42_p0  ;;  %p142_p7 = scmp.lt.s32.totalorder %s1146_s18, 3 }
   0xb   : > { %p1220_p6 = por %p135_p3, %p42_p0  ;;  %s1148_s24 = smov [#allocation5]  }
   0xc   : > { %s1479_s21 = scalar_select %p1215_p4, 1, 0 }
   0xd   : > { %s1480_s22 = scalar_select %p1220_p6, 1, 0 }
   0xe   : > { %p1225_p8 = pnand %p718_p5, %p142_p7  ;;  %s154_s25 = sshll.u32 %s1148_s24, 4  ;;  %s1229_s25 = int_to_ptr.vmem [resolvable:$true] %s154_s25 }
   0xf   : > { %s1149_s27 = smov [#allocation7]   ;;  %s958_s5 = scalar_lea.hbm %s1471_s1, 128 }
  0x10   : > { %s1481_s23 = scalar_select %p1225_p8, 1, 0 }
  0x11   : > { %p881_p9 = pneg %p1225_p8  ;;  %s167_s28 = sshll.u32 %s1149_s27, 4  ;;  %s1240_s28 = int_to_ptr.vmem [resolvable:$true] %s167_s28 }
  0x12   : > { %p959_p12 = scmp.ne.s32.totalorder %s1471_s1, %s958_s5  ;;  %p965_p5 = scmp.lt.u32.totalorder %s958_s5, %s1471_s1 }
  0x13   : > { %p1236_p11 = pnand %p881_p9, %p1475_p1 }
  0x15   : > { %p1250_p13 = pneg %p1236_p11 }
  0x17   : > { %p961_p0 = pnand %p1250_p13, %p959_p12 }
  0x19   : > { %p962_p3 = pneg %p961_p0 }
  0x1b   : > { %p967_p7 = pnand %p965_p5, %p962_p3 }
  0x1d   : > { %970 = shalt.err (!%p967_p7)
}
  0x1e   : > { %s971_s11 = scalar_lea.vmem %s1229_s25, 128  ;;  %p979_p2 = scmp.lt.s32.totalorder %s1229_s25, %s1229_s25 }
  0x1f   : > { %p972_p9 = scmp.ne.s32.totalorder %s1229_s25, %s971_s11  ;;  %p980_p6 = scmp.lt.s32.totalorder %s971_s11, %s971_s11 }
  0x21   : > { %p974_p10 = pnand %p972_p9, %p1250_p13  ;;  %p981_p12 = por %p980_p6, %p979_p2 }
  0x23   : > { %p975_p1 = pneg %p974_p10 }
  0x25   : > { %p982_p0 = pnand %p981_p12, %p975_p1 }
  0x27   : > { %985 = shalt.err (!%p982_p0)
}
  0x28   : > { %s1476_s12 = smov 64   ;;  %s1151_s13 = smov 4  }
  0x29   : > { %884 = dma.hbm_to_vmem [thread:$0]  (!%p1236_p11), %s1471_s1, 128, %s1229_s25, [#allocation6], %s1476_s12, %s1476_s12, %s1151_s13  }
  0x2a   : > { %s986_s29 = scalar_lea.hbm %s1472_s2, 1024 }
  0x2b   : > { %p987_p1 = scmp.ne.s32.totalorder %s1472_s2, %s986_s29  ;;  %p993_p10 = scmp.lt.u32.totalorder %s986_s29, %s1472_s2 }
  0x2d   : > { %p989_p2 = pnand %p987_p1, %p1250_p13 }
  0x2f   : > { %p990_p6 = pneg %p989_p2 }
  0x31   : > { %p995_p3 = pnand %p993_p10, %p990_p6 }
  0x33   : > { %998 = shalt.err (!%p995_p3)
}
  0x34   : > { %s999_s25 = scalar_lea.vmem %s1240_s28, 1024  ;;  %p1007_p12 = scmp.lt.s32.totalorder %s1240_s28, %s1240_s28 }
  0x35   : > { %p1000_p5 = scmp.ne.s32.totalorder %s1240_s28, %s999_s25  ;;  %p1008_p0 = scmp.lt.s32.totalorder %s999_s25, %s999_s25 }
  0x37   : > { %p1002_p7 = pnand %p1000_p5, %p1250_p13  ;;  %p1009_p1 = por %p1008_p0, %p1007_p12 }
  0x39   : > { %p1003_p9 = pneg %p1002_p7 }
  0x3b   : > { %p1010_p2 = pnand %p1009_p1, %p1003_p9 }
  0x3d   : > { %1013 = shalt.err (!%p1010_p2)
}
  0x3e   : > { %s1152_s9 = smov 128   ;;  %s1153_s10 = smov 8  }
  0x3f   : > { %887 = dma.hbm_to_vmem [thread:$0]  (!%p1236_p11), %s1472_s2, 1024, %s1240_s28, [#allocation6], %s1152_s9, %s1152_s9, %s1153_s10  }
  0x40   : > { %s1154_s20 = smov [#allocation8]   ;;  %s1298_s27 = sadd.s32 1, %s1146_s18  }
  0x41   : > { %s181_s24 = sshll.u32 %s1154_s20, 4  ;;  %s1014_s5 = scalar_lea.hbm %s1473_s3, 32  ;;  %s182_s24 = int_to_ptr.vmem [resolvable:$true] %s181_s24 }
  0x42   : > { %p1015_p6 = scmp.ne.s32.totalorder %s1473_s3, %s1014_s5  ;;  %p1021_p5 = scmp.lt.u32.totalorder %s1014_s5, %s1473_s3 }
  0x44   : > { %p1017_p10 = pnand %p1015_p6, %p1250_p13 }
  0x46   : > { %p1018_p3 = pneg %p1017_p10 }
  0x48   : > { %p1023_p7 = pnand %p1021_p5, %p1018_p3 }
  0x4a   : > { %1026 = shalt.err (!%p1023_p7)
}
  0x4b   : > { %s1027_s28 = scalar_lea.vmem %s182_s24, 32  ;;  %p1035_p1 = scmp.lt.s32.totalorder %s182_s24, %s182_s24 }
  0x4c   : > { %p1028_p9 = scmp.ne.s32.totalorder %s182_s24, %s1027_s28  ;;  %p1036_p2 = scmp.lt.s32.totalorder %s1027_s28, %s1027_s28 }
  0x4e   : > { %p1030_p12 = pnand %p1028_p9, %p1250_p13  ;;  %p1037_p4 = por %p1036_p2, %p1035_p1 }
  0x50   : > { %p1031_p0 = pneg %p1030_p12 }
  0x52   : > { %p1038_p8 = pnand %p1037_p4, %p1031_p0 }
  0x54   : > { %1041 = shalt.err (!%p1038_p8)
}
  0x55   : > { %890 = dma.hbm_to_vmem [thread:$0]  (!%p1236_p11), %s1473_s3, 32, %s182_s24, [#allocation9]  }
  0x56   : > { %s26_s8 = ssub.s32 %s1146_s18, %s1298_s27  ;;  %s29_s12 = sadd.s32 1, %s1142_s17 }
  0x57   : > { %p27_p4 = scmp.eq.s32.totalorder %s26_s8, 0  ;;  %p36_p8 = scmp.ne.s32.totalorder %s1142_s17, %s1138_s16 }
  0x58   : > { %p37_p13 = scmp.eq.s32.totalorder %s1146_s18, 0  ;;  %p902_p6 = scmp.lt.s32.totalorder %s1146_s18, 2 }
  0x59   : > { %s1326_s26 = scalar_select %p27_p4, %s1142_s17, %s29_s12  }
  0x5a   : > { %p38_p10 = por %p37_p13, %p36_p8  ;;  %p1484_p3 = scmp.eq.s32.totalorder %s1206_s19, 1 }
  0x5b   : > { %s192_s14 = sand.u32 1, %s1142_s17   ;;  %s771_s20 = sshll.u32 %s1146_s18, 10 }
  0x5c   : > { %p1330_p5 = por %p1484_p3, %p36_p8  ;;  %s723_s29 = sshll.u32 %s192_s14, 6 }
  0x5d   : > { %s1339_s24 = scalar_lea.hbm %s1470_s0, %s771_s20  ;;  %s196_s6 = scalar_lea.vmem [#allocation2], %s723_s29 }
  0x5e   : > { %s203_s7 = sshll.u32 %s196_s6, 4  ;;  %p1341_p11 = pnand %p902_p6, %p38_p10  ;;  %s1345_s7 = int_to_ptr.vmem [resolvable:$true] %s203_s7 }
  0x5f   : > { %s1347_s28 = scalar_lea.sflag [#allocation3], %s192_s14  ;;  %s1042_s9 = scalar_lea.hbm %s1339_s24, 1024 }
  0x60   : > { %p1043_p7 = scmp.ne.s32.totalorder %s1339_s24, %s1042_s9  ;;  %p1044_p9 = pneg %p1341_p11 }
  0x61   : > { %s1047_s12 = scalar_lea.hbm %s1470_s0, 2048  ;;  %p1048_p1 = scmp.lt.u32.totalorder %s1339_s24, %s1470_s0 }
  0x62   : > { %p1045_p12 = pnand %p1044_p9, %p1043_p7  ;;  %p1049_p2 = scmp.lt.u32.totalorder %s1047_s12, %s1042_s9 }
  0x63   : > { %p1051_p8 = scmp.lt.u32.totalorder %s1042_s9, %s1339_s24 }
  0x64   : > { %p1046_p0 = pneg %p1045_p12  ;;  %p1050_p4 = por %p1049_p2, %p1048_p1 }
  0x66   : > { %p1052_p13 = por %p1051_p8, %p1050_p4 }
  0x68   : > { %p1053_p6 = pnand %p1052_p13, %p1046_p0 }
  0x6a   : > { %1056 = shalt.err (!%p1053_p6)
}
  0x6b   : > { %s1057_s14 = scalar_lea.vmem %s1345_s7, 1024  ;;  %s1155_s30 = smov [#allocation2]  }
  0x6c   : > { %p1058_p10 = scmp.ne.s32.totalorder %s1345_s7, %s1057_s14  ;;  %s1062_s5 = sshll.u32 %s1155_s30, 4  ;;  %s1063_s5 = int_to_ptr.vmem [resolvable:$false] %s1062_s5 }
  0x6d   : > { %s1064_s6 = scalar_lea.vmem %s1063_s5, 2048  ;;  %p1065_p12 = scmp.lt.s32.totalorder %s1345_s7, %s1063_s5 }
  0x6e   : > { %p1060_p3 = pnand %p1058_p10, %p1044_p9  ;;  %p1066_p1 = scmp.lt.s32.totalorder %s1064_s6, %s1057_s14 }
  0x70   : > { %p1061_p7 = pneg %p1060_p3  ;;  %p1067_p2 = por %p1066_p1, %p1065_p12 }
  0x72   : > { %p1068_p4 = pnand %p1067_p2, %p1061_p7 }
  0x74   : > { %1071 = shalt.err (!%p1068_p4)
}
  0x75   : > { %s1487_s9 = smov 64   ;;  %p1488_p9 = scmp.ne.s32.totalorder %s1481_s23, 0 }
  0x76   : > { %894 = dma.hbm_to_vmem [thread:$0]  (!%p1341_p11), %s1339_s24, 1024, %s1345_s7, %s1347_s28, %s1487_s9, %s1487_s9, %s1151_s13  }
  0x77   : > { %215 = sbr.rel (%p1488_p9) target bundleno = 383 (0x17f), region = 36  ;;  %s1381_s10 = sand.u32 (!%p1488_p9), 1, %s1138_s16  }
  0x78   : > { %s727_s8 = sshll.u32 (!%p1488_p9), %s1381_s10, 6  ;;  %s218_s12 = scalar_lea.sflag (!%p1488_p9), [#allocation3], %s1381_s10 }
  0x79   : > { %s221_s25 = scalar_lea.vmem (!%p1488_p9), [#allocation2], %s727_s8  ;;  %p1489_p0 = scmp.ne.s32.totalorder (!%p1488_p9), %s1479_s21, 0 }
  0x7e   : > { %1117 = dma.done.wait (%p1489_p0), %s218_s12, 1024  }
  0x7f   : > { %1119 = vsyncadd (%p1489_p0), %s218_s12, 4294966272  ;;  %p1490_p11 = scmp.eq.s32.totalorder %s1206_s19, 0 }
  0x81   : > { %1121 = dma.done.wait (%p1490_p11), [#allocation6], 1152   ;;  %p1491_p8 = pmov %p1490_p11 }
  0x83   : > { %1123 = vsyncadd (%p1491_p8), [#allocation6], 4294966144  ;;  %p1492_p13 = pmov %p1491_p8 }
  0x84   : > { %p1493_p6 = pmov %p1491_p8 }
  0x85   : > { %1125 = dma.done.wait (%p1492_p13), [#allocation9], 32  }
  0x86   : > { %1127 = vsyncadd (%p1493_p6), [#allocation9], 4294967264  ;;  %v949_v0 = vld [vmem:[#allocation5] sm:$0xff]   ;;  %vm325_vm0 = vcmask 130048   ;;  %v952_v3 = vld [vmem:[%s221_s25 + $0x8] sm:$0xff]   ;;  %v484_v11 = vlaneseq  ;;  %s1409_s21 = scalar_lea.vmem [#allocation10], %s727_s8 }
  0x87   : > { %v950_v1 = vld [vmem:[%s221_s25] sm:$0xff]   ;;  %845 = vmatprep.subr.bf16.mxu0 %v949_v0  ;;  %863 = vmatprep.subr.bf16.mxu1 %v949_v0  ;;  %v953_v4 = vld [vmem:[%s221_s25 + $0x28] sm:$0xff]   ;;  %v954_v5 = vld [vmem:[%s221_s25 + $0x10] sm:$0xff]   ;;  %v1156_v9 = vmov 1966171168   ;;  %s788_s23 = sshll.u32 %s1206_s19, 10 }
  0x88   : > { %v951_v2 = vld [vmem:[%s221_s25 + $0x20] sm:$0xff]   ;;  %846 = vmatpush3.bf16.msra.mxu0 %v949_v0  ;;  %864 = vmatpush3.bf16.msra.mxu1 %v949_v0  ;;  %v955_v6 = vld [vmem:[%s221_s25 + $0x30] sm:$0xff]   ;;  %v956_v7 = vld [vmem:[%s221_s25 + $0x18] sm:$0xff]   ;;  %v482_v10 = vunpack.c.l.s4 %v1156_v9  ;;  %v485_v13 = vshrl.u32 %v484_v11, 7  ;;  %s615_s13 = sshll.u32 %s1409_s21, 4  ;;  %s1420_s19 = scalar_lea.hbm %s1474_s4, %s788_s23  ;;  %s1422_s13 = int_to_ptr.vmem [resolvable:$true] %s615_s13 }
  0x89   : > { %847 = vmatprep.mubr.msk.bf16.mxu0 %vm325_vm0, %v950_v1  ;;  %855 = vmatprep.mubr.msk.bf16.mxu1 %vm325_vm0, %v951_v2  ;;  %v957_v8 = vld [vmem:[%s221_s25 + $0x38] sm:$0xff]   ;;  %v749_v14 = vld.sshfl [vmem:[#allocation8] sm:$0x11 pattern:$0x75316420]  ;;  %v451_v24 = vld [vmem:[#allocation7 + $0x18] sm:$0xff] }
  0x8a   : > { %v483_v12 = vunpack.c.0.s8 %v482_v10  ;;  %v480_v16 = vcombine.high %v749_v14, %v749_v14  ;;  %v497_v18 = vsub.s32 0, %v485_v13  ;;  %v450_v20 = vld [vmem:[#allocation7 + $0x10] sm:$0xff]  ;;  %v448_v21 = vld [vmem:[#allocation7] sm:$0xff]  ;;  %v449_v31 = vld [vmem:[#allocation7 + $0x8] sm:$0xff]  ;;  %s602_s28 = scalar_lea.sflag [#allocation4], %s1381_s10  ;;  %s1072_s20 = scalar_lea.vmem %s1422_s13, 1024 }
  0x8b   : > { %848 = vmatmul.mubr.msk.bf16.vlgmr.msra.gmra.mrb[0].mxu0 %vm325_vm0, %v952_v3  ;;  %856 = vmatmul.mubr.msk.bf16.vlgmr.msra.gmra.mrb[0].mxu1 %vm325_vm0, %v953_v4  ;;  %v454_v50 = vld [vmem:[#allocation7 + $0x30] sm:$0xff]  ;;  %v452_v53 = vld [vmem:[#allocation7 + $0x20] sm:$0xff]  ;;  %v455_v58 = vld [vmem:[#allocation7 + $0x38] sm:$0xff]  ;;  %p1073_p10 = scmp.ne.s32.totalorder %s1422_s13, %s1072_s20  ;;  %s1157_s29 = smov [#allocation10]  }
  0x8c   : > { %851 = vmatprep.mubr.msk.bf16.mxu0 %vm325_vm0, %v954_v5  ;;  %859 = vmatprep.mubr.msk.bf16.mxu1 %vm325_vm0, %v955_v6  ;;  %v486_v15 = vsub.s32 %v483_v12, %v485_v13  ;;  %v453_v63 = vld [vmem:[#allocation7 + $0x28] sm:$0xff]  ;;  %s1076_s14 = sshll.u32 %s1157_s29, 4  ;;  %s1077_s14 = int_to_ptr.vmem [resolvable:$false] %s1076_s14 }
  0x8d   : > { %p1074_p3 = pnand %p1073_p10, %p1330_p5  ;;  %s1078_s30 = scalar_lea.vmem %s1077_s14, 2048 }
  0x8e   : > { %v487_v17 = vrot.slane %v749_v14, %v486_v15  ;;  %v494_v19 = vrot.slane %v480_v16, %v486_v15  ;;  %p1079_p12 = scmp.lt.s32.totalorder %s1422_s13, %s1077_s14  ;;  %p1080_p1 = scmp.lt.s32.totalorder %s1078_s30, %s1072_s20 }
  0x8f   : > { %p1075_p7 = pneg %p1074_p3 }
  0x90   : > { %v498_v26 = vrot.slane %v487_v17, %v497_v18  ;;  %v502_v28 = vrot.slane %v494_v19, %v497_v18  ;;  %p1081_p2 = por %p1080_p1, %p1079_p12 }
  0x92   : > { %p1082_p4 = pnand %p1081_p2, %p1075_p7 }
  0x93   : > { %852 = vmatmul.mubr.msk.bf16.gmra.mrb[4].mxu0 %vm325_vm0, %v956_v7  ;;  %860 = vmatmul.mubr.msk.bf16.gmra.mrb[4].mxu1 %vm325_vm0, %v957_v8 }
 0x15e   : > { %v849_v22 = vpop.f32.mrb[0].mxu0  ;;  %v857_v23 = vpop.f32.mrb[0].mxu1 }
 0x15f   : > { %v458_v25 = vadd.f32 %v849_v22, %v450_v20  ;;  %v466_v27 = vadd.f32 %v857_v23, %v450_v20  ;;  %v384_v29 = vpop.f32.mrb[1].mxu0  ;;  %v416_v30 = vpop.f32.mrb[1].mxu1 }
 0x160   : > { %v456_v32 = vadd.f32 %v448_v21, %v384_v29  ;;  %v464_v33 = vadd.f32 %v448_v21, %v416_v30  ;;  %v850_v34 = vpop.f32.mrb[2].mxu0  ;;  %v858_v35 = vpop.f32.mrb[2].mxu1 }
 0x161   : > { %v459_v36 = vadd.f32 %v850_v34, %v451_v24  ;;  %v467_v37 = vadd.f32 %v858_v35, %v451_v24  ;;  %v387_v38 = vpop.f32.mrb[3].mxu0  ;;  %v419_v39 = vpop.f32.mrb[3].mxu1  ;;  %v507_v42 = vadd.f32 %v498_v26, %v458_v25  ;;  %v515_v43 = vadd.f32 %v502_v28, %v466_v27 }
 0x162   : > { %v457_v40 = vadd.f32 %v449_v31, %v387_v38  ;;  %v465_v41 = vadd.f32 %v449_v31, %v419_v39  ;;  %v505_v46 = vadd.f32 %v498_v26, %v456_v32  ;;  %v513_v47 = vadd.f32 %v502_v28, %v464_v33 }
 0x163   : > { %v508_v44 = vadd.f32 %v498_v26, %v459_v36  ;;  %v516_v45 = vadd.f32 %v502_v28, %v467_v37 }
 0x164   : > { %v506_v48 = vadd.f32 %v498_v26, %v457_v40  ;;  %v514_v49 = vadd.f32 %v502_v28, %v465_v41 }
 0x165   : > { %v797_v51 = vpack.c.bf16 %v508_v44, %v507_v42  ;;  %v817_v52 = vpack.c.bf16 %v516_v45, %v515_v43 }
 0x166   : > { %v792_v54 = vpack.c.bf16 %v506_v48, %v505_v46  ;;  %v812_v55 = vpack.c.bf16 %v514_v49, %v513_v47  ;;  %v853_v56 = vpop.f32.mrb[4].mxu0  ;;  %v861_v57 = vpop.f32.mrb[4].mxu1 }
 0x167   : > { %829 = vst [vmem:[%s1409_s21 + $0x8] sm:$0xff] %v797_v51   ;;  %833 = vst [vmem:[%s1409_s21 + $0x28] sm:$0xff] %v817_v52   ;;  %v462_v59 = vadd.f32 %v853_v56, %v454_v50  ;;  %v470_v60 = vadd.f32 %v861_v57, %v454_v50  ;;  %v400_v61 = vpop.f32.mrb[5].mxu0  ;;  %v432_v62 = vpop.f32.mrb[5].mxu1 }
 0x168   : > { %793 = vst [vmem:[%s1409_s21] sm:$0xff] %v792_v54   ;;  %832 = vst [vmem:[%s1409_s21 + $0x20] sm:$0xff] %v812_v55   ;;  %v460_v0 = vadd.f32 %v452_v53, %v400_v61  ;;  %v468_v1 = vadd.f32 %v452_v53, %v432_v62  ;;  %v854_v2 = vpop.f32.mrb[6].mxu0  ;;  %v862_v3 = vpop.f32.mrb[6].mxu1 }
 0x169   : > { %v463_v4 = vadd.f32 %v854_v2, %v455_v58  ;;  %v471_v5 = vadd.f32 %v862_v3, %v455_v58  ;;  %v403_v6 = vpop.f32.mrb[7].mxu0  ;;  %v435_v7 = vpop.f32.mrb[7].mxu1  ;;  %v511_v10 = vadd.f32 %v498_v26, %v462_v59  ;;  %v519_v11 = vadd.f32 %v502_v28, %v470_v60 }
 0x16a   : > { %v461_v8 = vadd.f32 %v453_v63, %v403_v6  ;;  %v469_v9 = vadd.f32 %v453_v63, %v435_v7  ;;  %v509_v14 = vadd.f32 %v498_v26, %v460_v0  ;;  %v517_v15 = vadd.f32 %v502_v28, %v468_v1 }
 0x16b   : > { %v512_v12 = vadd.f32 %v498_v26, %v463_v4  ;;  %v520_v13 = vadd.f32 %v502_v28, %v471_v5 }
 0x16c   : > { %v510_v16 = vadd.f32 %v498_v26, %v461_v8  ;;  %v518_v17 = vadd.f32 %v502_v28, %v469_v9 }
 0x16d   : > { %v807_v18 = vpack.c.bf16 %v512_v12, %v511_v10  ;;  %v827_v19 = vpack.c.bf16 %v520_v13, %v519_v11 }
 0x16e   : > { %v802_v20 = vpack.c.bf16 %v510_v16, %v509_v14  ;;  %v822_v21 = vpack.c.bf16 %v518_v17, %v517_v15 }
 0x16f   : > { %831 = vst [vmem:[%s1409_s21 + $0x18] sm:$0xff] %v807_v18   ;;  %835 = vst [vmem:[%s1409_s21 + $0x38] sm:$0xff] %v827_v19  }
 0x170   : > { %830 = vst [vmem:[%s1409_s21 + $0x10] sm:$0xff] %v802_v20   ;;  %834 = vst [vmem:[%s1409_s21 + $0x30] sm:$0xff] %v822_v21  }
 0x171   : > { %1085 = shalt.err (!%p1082_p4)
}
 0x172   : > { %s1086_s5 = scalar_lea.hbm %s1420_s19, 1024  ;;  %s1090_s8 = scalar_lea.hbm %s1474_s4, 2048 }
 0x173   : > { %p1087_p9 = scmp.ne.s32.totalorder %s1420_s19, %s1086_s5  ;;  %p1091_p8 = scmp.lt.u32.totalorder %s1420_s19, %s1474_s4 }
 0x174   : > { %p1092_p13 = scmp.lt.u32.totalorder %s1090_s8, %s1086_s5  ;;  %p1094_p10 = scmp.lt.u32.totalorder %s1086_s5, %s1420_s19 }
 0x175   : > { %p1088_p0 = pnand %p1087_p9, %p1330_p5 }
 0x176   : > { %p1093_p6 = por %p1092_p13, %p1091_p8 }
 0x177   : > { %p1089_p11 = pneg %p1088_p0 }
 0x178   : > { %p1095_p3 = por %p1094_p10, %p1093_p6 }
 0x17a   : > { %p1096_p7 = pnand %p1095_p3, %p1089_p11 }
 0x17c   : > { %1099 = shalt.err (!%p1096_p7)
}
 0x17d   : > { %s1158_s21 = smov 64   ;;  %s1159_s23 = smov 4  }
 0x17e   : > { %879 = dma.vmem_to_hbm [thread:$0]  (%p1330_p5), %s1422_s13, 1024, %s1420_s19, %s602_s28, %s1158_s21, %s1158_s21, %s1159_s23  }
 0x17f PF: > { %s630_s24 = sand.u32 1, %s1134_s15   ;;  %p1494_p12 = scmp.ne.s32.totalorder %s1480_s22, 0 }
 0x180   : > { %p1495_p1 = scmp.ge.s32.totalorder %s1146_s18, 2  ;;  %s631_s7 = scalar_lea.sflag [#allocation4], %s630_s24 }
 0x182   : > { %p896_p2 = pnand %p1495_p1, %p1494_p12 }
 0x184   : > { %1129 = dma.done.wait (!%p896_p2), %s631_s7, 1024  }
 0x185   : > { %1131 = vsyncadd (!%p896_p2), %s631_s7, 4294966272  ;;  %p19_p4 = scmp.ge.s32.totalorder %s1298_s27, 4   ;;  %s1496_s15 = smov %s1138_s16 }
 0x186   : > { %s1497_s16 = smov %s1142_s17  ;;  %s1498_s17 = smov %s1326_s26 }
 0x187   : > { %s1499_s18 = smov %s1298_s27  ;;  %21 = sbr.rel (!%p19_p4) target bundleno = 7 (0x7), region = 93 }
 0x18e   :  { %636 = vsyncpa [#allocation3], 1 }
 0x18f   :  { %638 = vsyncpa [#allocation3 + $0x1], 1 }
 0x190   :  { %639 = vsyncpa [#allocation6], 1 }
 0x191   :  { %640 = vsyncpa [#allocation9], 1 }
 0x192   :  { %641 = vsyncpa [#allocation4], 1 }
 0x193   :  { %643 = vsyncpa [#allocation4 + $0x1], 1 }

</bundles_post_ra>
